<compile_context>
chip_gen: v5e
topology: v5e:2x2
jax: 0.10.0
libtpu: 0.0.40
codegen_flags: <defaults>
</compile_context>

<pallas_src>
import math

import jax
import jax.numpy as jnp
from jax.experimental import pallas as pl
from jax.experimental.pallas import tpu as pltpu


# ----------------------------------------------------------------------------
# Fused MLP kernel: one (TM, Din) tile of x -> (TM, Dout) tile of y
# ----------------------------------------------------------------------------
def _mlp_kernel(x_ref, w1_ref, b1_ref, w2_ref, b2_ref, o_ref):
    # x: (TM, Din); w1: (Din, H); b1: (1, H); w2: (H, Dout); b2: (1, Dout)
    x = x_ref[...]
    h = (
        jnp.dot(x.astype(w1_ref.dtype), w1_ref[...],
                preferred_element_type=jnp.float32)
        + b1_ref[...]
    )
    h = jnp.maximum(h, 0.0)  # ReLU
    # self.drop = nn.Dropout(0.0) -> identity; nothing to apply.
    y = (
        jnp.dot(h.astype(w2_ref.dtype), w2_ref[...],
                preferred_element_type=jnp.float32)
        + b2_ref[...]
    )
    o_ref[...] = y.astype(o_ref.dtype)


def _round_up(x, m):
    return (x + m - 1) // m * m


def _pick_tile_m(m, d_in, hidden, d_out, itemsize=4, tile_budget_bytes=20 << 20):
    """Largest M-tile (multiple of 8, <= 512) that keeps double-buffered x/y
    tiles plus resident weights inside a conservative VMEM budget (v7x-safe)."""
    resident = 2 * itemsize * (d_in * hidden + hidden + hidden * d_out + d_out)
    # double-buffered x & y tiles + f32 hidden intermediate per row
    per_row = itemsize * (2 * d_in + 2 * d_out) + 4 * hidden
    rows = (tile_budget_bytes - resident) // max(per_row, 1)
    tile = min(512, max(int(rows), 8), _round_up(m, 8))
    return max(8, (tile // 8) * 8)


# ----------------------------------------------------------------------------
# Wrapper
# ----------------------------------------------------------------------------
def mlp_forward(x, w1, b1, w2, b2, *, tile_m=None,
                vmem_limit_bytes=32 * 1024 * 1024):
    """x: (..., Din); w1: (Din, H); b1: (H,); w2: (H, Dout); b2: (Dout,).
    Weights are stored transposed relative to nn.Linear, i.e. (in, out)."""
    lead_shape = x.shape[:-1]
    d_in = x.shape[-1]
    hidden = w1.shape[1]
    d_out = w2.shape[1]
    m = int(math.prod(lead_shape)) if lead_shape else 1
    x2d = x.reshape(m, d_in)

    if tile_m is None:
        tile_m = _pick_tile_m(m, d_in, hidden, d_out, itemsize=x.dtype.itemsize)

    m_pad = _round_up(m, tile_m)
    if m_pad != m:
        # Padded rows compute garbage that is sliced off below.
        x2d = jnp.pad(x2d, ((0, m_pad - m), (0, 0)))

    out = pl.pallas_call(
        _mlp_kernel,
        out_shape=jax.ShapeDtypeStruct((m_pad, d_out), x.dtype),
        grid=(m_pad // tile_m,),
        in_specs=[
            pl.BlockSpec((tile_m, d_in), lambda i: (i, 0)),   # x tile (pipelined)
            pl.BlockSpec((d_in, hidden), lambda i: (0, 0)),   # W1 resident
            pl.BlockSpec((1, hidden), lambda i: (0, 0)),      # b1 resident
            pl.BlockSpec((hidden, d_out), lambda i: (0, 0)),  # W2 resident
            pl.BlockSpec((1, d_out), lambda i: (0, 0)),       # b2 resident
        ],
        out_specs=pl.BlockSpec((tile_m, d_out), lambda i: (i, 0)),
        compiler_params=pltpu.CompilerParams(
            dimension_semantics=("parallel",),     # megacore sharding on v7x
            vmem_limit_bytes=vmem_limit_bytes,
        ),
    )(
        x2d,
        w1,
        b1.reshape(1, hidden).astype(jnp.float32),
        w2,
        b2.reshape(1, d_out).astype(jnp.float32),
    )

    if m_pad != m:
        out = out[:m]
    return out.reshape(*lead_shape, d_out)


# ----------------------------------------------------------------------------
# Pure-JAX reference (mirrors the PyTorch forward exactly)
# ----------------------------------------------------------------------------
def mlp_ref(x, w1, b1, w2, b2):
    h = jnp.maximum(x @ w1 + b1, 0.0)  # fc1 + ReLU (+ Dropout(0.0) identity)
    return h @ w2 + b2                 # fc2 (+ Dropout(0.0) identity)


# ----------------------------------------------------------------------------
# Main
# ----------------------------------------------------------------------------
if __name__ == "__main__":
    # Token-feature layout (B, N, C) as used in efficient_pt.py.
    B, N = 2, 8
    in_features = 32
    hidden_features = in_features // 4   # module default: in_features // 4 = 8
    out_features = in_features           # module default: out_features = in_features

    key = jax.random.PRNGKey(0)
    k_x, k_w1, k_b1, k_w2, k_b2 = jax.random.split(key, 5)
    x = jax.random.normal(k_x, (B, N, in_features), jnp.float32)
    w1 = jax.random.normal(k_w1, (in_features, hidden_features), jnp.float32) / math.sqrt(in_features)
    b1 = jax.random.normal(k_b1, (hidden_features,), jnp.float32) * 0.01
    w2 = jax.random.normal(k_w2, (hidden_features, out_features), jnp.float32) / math.sqrt(hidden_features)
    b2 = jax.random.normal(k_b2, (out_features,), jnp.float32) * 0.01

    y = mlp_forward(x, w1, b1, w2, b2)
    jax.block_until_ready(y)

    y_ref = mlp_ref(x, w1, b1, w2, b2)
    assert y.shape == (B, N, out_features)
    assert jnp.allclose(y, y_ref, rtol=1e-4, atol=1e-4), "mismatch vs reference"

    print("KERNEL_OK")
</pallas_src>

<mosaic_0001>
module attributes {stable_mosaic.version = 11 : i64} {
  func.func @_mlp_kernel(%arg0: i32, %arg1: memref<16x32xf32, #tpu.memory_space<vmem>>, %arg2: memref<32x8xf32, #tpu.memory_space<vmem>>, %arg3: memref<1x8xf32, #tpu.memory_space<vmem>>, %arg4: memref<8x32xf32, #tpu.memory_space<vmem>>, %arg5: memref<1x32xf32, #tpu.memory_space<vmem>>, %arg6: memref<16x32xf32, #tpu.memory_space<vmem>>) attributes {dimension_semantics = [#tpu.dimension_semantics<parallel>], iteration_bounds = array<i64: 1>, scalar_prefetch = 0 : i64, scratch_operands = 0 : i64, tpu.core_type = #tpu.core_type<tc>, window_params = [{transform_indices = @transform_0, window_bounds = array<i64: 16, 32>}, {pipeline_mode = #tpu.pipeline_mode<synchronous>, transform_indices = @transform_1, window_bounds = array<i64: 32, 8>}, {pipeline_mode = #tpu.pipeline_mode<synchronous>, transform_indices = @transform_2, window_bounds = array<i64: 1, 8>}, {pipeline_mode = #tpu.pipeline_mode<synchronous>, transform_indices = @transform_3, window_bounds = array<i64: 8, 32>}, {pipeline_mode = #tpu.pipeline_mode<synchronous>, transform_indices = @transform_4, window_bounds = array<i64: 1, 32>}, {transform_indices = @transform_5, window_bounds = array<i64: 16, 32>}]} {
    %c0 = arith.constant 0 : index
    %c0_0 = arith.constant 0 : index
    %0 = vector.load %arg1[%c0, %c0_0] : memref<16x32xf32, #tpu.memory_space<vmem>>, vector<16x32xf32>
    %c0_1 = arith.constant 0 : index
    %c0_2 = arith.constant 0 : index
    %1 = vector.load %arg2[%c0_1, %c0_2] : memref<32x8xf32, #tpu.memory_space<vmem>>, vector<32x8xf32>
    %cst = arith.constant dense<0.000000e+00> : vector<16x8xf32>
    %2 = tpu.matmul %0, %1, %cst {dimension_numbers = #tpu.dot_dimension_numbers<[1], [0], [0], [1], [0, 0, 1, 1], [], []>} : vector<16x32xf32>, vector<32x8xf32>, vector<16x8xf32> -> vector<16x8xf32>
    %c0_3 = arith.constant 0 : index
    %c0_4 = arith.constant 0 : index
    %3 = vector.load %arg3[%c0_3, %c0_4] : memref<1x8xf32, #tpu.memory_space<vmem>>, vector<1x8xf32>
    %4 = vector.broadcast %3 : vector<1x8xf32> to vector<16x8xf32>
    %5 = arith.addf %2, %4 : vector<16x8xf32>
    %cst_5 = arith.constant 0.000000e+00 : f32
    %6 = vector.broadcast %cst_5 : f32 to vector<16x8xf32>
    %7 = arith.maximumf %5, %6 : vector<16x8xf32>
    %c0_6 = arith.constant 0 : index
    %c0_7 = arith.constant 0 : index
    %8 = vector.load %arg4[%c0_6, %c0_7] : memref<8x32xf32, #tpu.memory_space<vmem>>, vector<8x32xf32>
    %cst_8 = arith.constant dense<0.000000e+00> : vector<16x32xf32>
    %9 = tpu.matmul %7, %8, %cst_8 {dimension_numbers = #tpu.dot_dimension_numbers<[1], [0], [0], [1], [0, 0, 1, 1], [], []>} : vector<16x8xf32>, vector<8x32xf32>, vector<16x32xf32> -> vector<16x32xf32>
    %c0_9 = arith.constant 0 : index
    %c0_10 = arith.constant 0 : index
    %10 = vector.load %arg5[%c0_9, %c0_10] : memref<1x32xf32, #tpu.memory_space<vmem>>, vector<1x32xf32>
    %11 = vector.broadcast %10 : vector<1x32xf32> to vector<16x32xf32>
    %12 = arith.addf %9, %11 : vector<16x32xf32>
    %c0_11 = arith.constant 0 : index
    %c0_12 = arith.constant 0 : index
    %13 = vector.load %arg6[%c0_11, %c0_12] : memref<16x32xf32, #tpu.memory_space<vmem>>, vector<16x32xf32>
    tpu.vector_store %arg6[%c0_11, %c0_12], %12 {strides = array<i32>} : memref<16x32xf32, #tpu.memory_space<vmem>>, vector<16x32xf32>,
    return
  }
  func.func @transform_0(%arg0: i32) -> (i32, i32) {
    %c0_i32 = arith.constant 0 : i32
    %c0_i32_0 = arith.constant 0 : i32
    return %arg0, %c0_i32 : i32, i32
  }
  func.func @transform_1(%arg0: i32) -> (i32, i32) {
    %c0_i32 = arith.constant 0 : i32
    %c0_i32_0 = arith.constant 0 : i32
    %c0_i32_1 = arith.constant 0 : i32
    return %c0_i32, %c0_i32_0 : i32, i32
  }
  func.func @transform_2(%arg0: i32) -> (i32, i32) {
    %c0_i32 = arith.constant 0 : i32
    %c0_i32_0 = arith.constant 0 : i32
    %c0_i32_1 = arith.constant 0 : i32
    return %c0_i32, %c0_i32_0 : i32, i32
  }
  func.func @transform_3(%arg0: i32) -> (i32, i32) {
    %c0_i32 = arith.constant 0 : i32
    %c0_i32_0 = arith.constant 0 : i32
    %c0_i32_1 = arith.constant 0 : i32
    return %c0_i32, %c0_i32_0 : i32, i32
  }
  func.func @transform_4(%arg0: i32) -> (i32, i32) {
    %c0_i32 = arith.constant 0 : i32
    %c0_i32_0 = arith.constant 0 : i32
    %c0_i32_1 = arith.constant 0 : i32
    return %c0_i32, %c0_i32_0 : i32, i32
  }
  func.func @transform_5(%arg0: i32) -> (i32, i32) {
    %c0_i32 = arith.constant 0 : i32
    %c0_i32_0 = arith.constant 0 : i32
    return %arg0, %c0_i32 : i32, i32
  }
}

</mosaic_0001>

<bundles_post_ra>
// kernel: tpu_custom_call.1
= control target key start
LH: loop header
LB: loop body
LE: loop exit
PB: predicated region body
PF: predicated region fallthrough
CT: control target
= control target key end

     0   :  { %s225_s0 = inlined_call_operand.vmem [shape: f32[16,32], index: 0, kind: input, shape index: {}]   ;;  %s226_s1 = inlined_call_operand.vmem [shape: f32[32,8], index: 1, kind: input, shape index: {}]   ;;  %s227_s2 = inlined_call_operand.vmem [shape: f32[1,8], index: 2, kind: input, shape index: {}]   ;;  %s228_s3 = inlined_call_operand.vmem [shape: f32[8,32], index: 3, kind: input, shape index: {}]   ;;  %s229_s4 = inlined_call_operand.vmem [shape: f32[1,32], index: 4, kind: input, shape index: {}]   ;;  %s230_s5 = inlined_call_operand.hbm [shape: f32[16,32], index: 5, kind: output, shape index: {}]  }
   0x1   :  { %v26_v0 = vld [vmem:[%s226_s1 + $0x18] sm:$0xff]  ;;  %v25_v1 = vld [vmem:[%s226_s1 + $0x10] sm:$0xff]  ;;  %v24_v2 = vld [vmem:[%s226_s1 + $0x8] sm:$0xff] }
   0x2   :  { %122 = vmatpush.msra.mxu2 %v26_v0  ;;  %50 = vmatpush.msra.mxu0 %v26_v0 }
   0x4   :  { %123 = vmatpush.msra.mxu2 %v25_v1  ;;  %51 = vmatpush.msra.mxu0 %v25_v1 }
   0x5   :  { %10 = vsyncpa [#allocation3], 0  ;;  %v23_v3 = vld [vmem:[%s226_s1] sm:$0xff]  ;;  %v22_v4 = vld [vmem:[%s225_s0 + $0x8] sm:$0xff]  ;;  %vm31_vm0 = vcmask 261120   ;;  %vm68_vm1 = vcmask 64512  }
   0x6   :  { %124 = vmatpush.msra.mxu2 %v24_v2  ;;  %52 = vmatpush.msra.mxu0 %v24_v2  ;;  %v21_v5 = vld [vmem:[%s225_s0] sm:$0xff]  ;;  %s106_s11 = sshll.u32 %s230_s5, 4  ;;  %s159_s12 = smov 128   ;;  %s107_s11 = int_to_ptr.hbm [resolvable:$true] %s106_s11 }
   0x7   :  { %v63_v6 = vld [vmem:[%s228_s3] sm:$0xff]  ;;  %s158_s3 = smov [#allocation2]   ;;  %s160_s13 = smov 8  }
   0x8   :  { %125 = vmatpush.msra.mxu2 %v23_v3  ;;  %53 = vmatpush.msra.mxu0 %v23_v3  ;;  %v130_v7 = vld [vmem:[%s227_s2] ss:$0 sm:$0xff]  ;;  %s104_s9 = sshll.u32 %s158_s3, 4  ;;  %s105_s9 = int_to_ptr.vmem [resolvable:$true] %s104_s9 }
   0x9   :  { %119 = vmatmul.msk.f32.vlgmr.msra.gmra.mxu2 %vm31_vm0, %v22_v4  ;;  %118 = vmatmul.msk.f32.vlgmr.msra.gmra.mxu0 %vm31_vm0, %v21_v5  ;;  %v131_v14 = vld [vmem:[%s229_s4] ss:$0 sm:$0xff] }
   0xa   :  { %126 = vmatpush.msra.mxu3 %v63_v6  ;;  %90 = vmatpush.msra.mxu1 %v63_v6 }
  0x86   :  { %v55_v8 = vpop.f32.mrf.mxu0 }
  0x87   :  { %v56_v9 = vadd.f32 %v130_v7, %v55_v8 }
  0x89   :  { %v61_v10 = vmax.f32 %v56_v9, 0.0 }
  0x8b   :  { %120 = vmatmul.msk.f32.vlgmr.msra.gmra.mxu1 %vm68_vm1, %v61_v10 }
  0x8c   :  { %v58_v11 = vpop.f32.mrf.mxu2 }
  0x8d   :  { %v59_v12 = vadd.f32 %v130_v7, %v58_v11 }
  0x8f   :  { %v62_v13 = vmax.f32 %v59_v12, 0.0 }
  0x91   :  { %121 = vmatmul.msk.f32.vlgmr.msra.gmra.mxu3 %vm68_vm1, %v62_v13 }
 0x108   :  { %v92_v15 = vpop.f32.mrf.mxu1 }
 0x109   :  { %v93_v16 = vadd.f32 %v131_v14, %v92_v15 }
 0x10b   :  { %98 = vst.msk [vmem:[#allocation2] sm:$0xff] %vm31_vm0, %v93_v16 }
 0x114   :  { %v95_v17 = vpop.f32.mrf.mxu3 }
 0x115   :  { %v96_v18 = vadd.f32 %v131_v14, %v95_v17 }
 0x117   :  { %99 = vst.msk [vmem:[#allocation2 + $0x8] sm:$0xff] %vm31_vm0, %v96_v18 }
 0x118   :  { %112 = dma.vmem_to_hbm [thread:$0]  %s105_s9, 256, %s107_s11, [#allocation3], %s159_s12, %s159_s12, %s160_s13  }
 0x119   :  { %156 = dma.done.wait [#allocation3], 256  }
 0x11a   :  { %157 = vsyncadd [#allocation3], 4294967040 }
 0x11b   :  { %117 = vsyncpa [#allocation3], 1 }

</bundles_post_ra>
